<compile_context>
chip_gen: v6e
topology: v6e:2x2x1
jax: 0.10.0
libtpu: 0.0.40
codegen_flags: <defaults>
</compile_context>

<pallas_src>
import functools

import jax
import jax.numpy as jnp
from jax.experimental import pallas as pl
from jax.experimental.pallas import tpu as pltpu

BN_EPS = 1e-5
BF16 = jnp.bfloat16
F32 = jnp.float32
VMEM_LIMIT = 32 * 1024 * 1024


# ----------------------------- Pallas kernels -----------------------------

def _conv1_kernel(xn_ref, diff_ref, wtop_ref, wbot_ref, b_ref, s_ref, t_ref,
                  pos_ref, pw1_ref, pb1_ref, ps1_ref, pt1_ref,
                  pw2_ref, pb2_ref, ps2_ref, pt2_ref, o_ref, *, k):
    """Edge-conv layer [2C->512] (split weight) + k-max + fused pos-enc MLP add."""
    m = xn_ref.shape[0]
    # edge part: (x_j - x_i) @ W_bot, rows are k-major (row = kk*m + node)
    e = jnp.dot(diff_ref[...], wbot_ref[...], preferred_element_type=F32)   # [k*m, nt]
    e_max = e[0:m]
    for kk in range(1, k):
        e_max = jnp.maximum(e_max, e[kk * m:(kk + 1) * m])                  # [m, nt]
    # node part computed once (not per neighbor): x_i @ W_top
    n = jnp.dot(xn_ref[...], wtop_ref[...], preferred_element_type=F32)     # [m, nt]
    # bias / ReLU / folded BN deferred past the k-max (scale >= 0 here)
    node = jnp.maximum(e_max + n + b_ref[...], 0.0) * s_ref[...] + t_ref[...]
    # fused positional-encoder MLP([2, 128, <tile of 512>]); the K=2 hidden layer is
    # two VPU broadcast-multiplies instead of an MXU push.
    pos = pos_ref[...]                                                      # [m, 2] f32
    h = (pos[:, 0:1] * pw1_ref[0:1, :] + pos[:, 1:2] * pw1_ref[1:2, :]
         + pb1_ref[...])
    h = jnp.maximum(h, 0.0) * ps1_ref[...] + pt1_ref[...]
    pe = jnp.dot(h.astype(BF16), pw2_ref[...], preferred_element_type=F32) + pb2_ref[...]
    pe = jnp.maximum(pe, 0.0) * ps2_ref[...] + pt2_ref[...]
    o_ref[...] = (node + pe).astype(o_ref.dtype)


def edge_conv1_with_pos(x_nodes, diff, layer, pos, pos_layers, *, k, n_tile=256):
    M, C = x_nodes.shape
    w_top, w_bot, b, s, t = layer
    (pw1, pb1, ps1, pt1), (pw2, pb2, ps2, pt2) = pos_layers
    N = w_top.shape[1]
    assert N % n_tile == 0
    grid = (N // n_tile,)
    return pl.pallas_call(
        functools.partial(_conv1_kernel, k=k),
        out_shape=jax.ShapeDtypeStruct((M, N), F32),
        grid=grid,
        in_specs=[
            pl.BlockSpec((M, C), lambda j: (0, 0)),
            pl.BlockSpec((k * M, C), lambda j: (0, 0)),
            pl.BlockSpec((C, n_tile), lambda j: (0, j)),
            pl.BlockSpec((C, n_tile), lambda j: (0, j)),
            pl.BlockSpec((1, n_tile), lambda j: (0, j)),
            pl.BlockSpec((1, n_tile), lambda j: (0, j)),
            pl.BlockSpec((1, n_tile), lambda j: (0, j)),
            pl.BlockSpec((M, 2), lambda j: (0, 0)),
            pl.BlockSpec((2, 128), lambda j: (0, 0)),
            pl.BlockSpec((1, 128), lambda j: (0, 0)),
            pl.BlockSpec((1, 128), lambda j: (0, 0)),
            pl.BlockSpec((1, 128), lambda j: (0, 0)),
            pl.BlockSpec((128, n_tile), lambda j: (0, j)),
            pl.BlockSpec((1, n_tile), lambda j: (0, j)),
            pl.BlockSpec((1, n_tile), lambda j: (0, j)),
            pl.BlockSpec((1, n_tile), lambda j: (0, j)),
        ],
        out_specs=pl.BlockSpec((M, n_tile), lambda j: (0, j)),
        compiler_params=pltpu.CompilerParams(
            dimension_semantics=("parallel",),
            vmem_limit_bytes=VMEM_LIMIT,
        ),
    )(x_nodes, diff, w_top, w_bot, b, s, t,
      pos, pw1, pb1, ps1, pt1, pw2, pb2, ps2, pt2)


def _conv2_kernel(xn_ref, diff_ref,
                  w1t_ref, w1b_ref, b1_ref, s1_ref, t1_ref,
                  w2_ref, b2_ref, s2_ref, t2_ref,
                  w3_ref, b3_ref, s3_ref, t3_ref, o_ref, a2_ref, *, k):
    """3-layer edge-conv MLP [2*512,512,1024,1024] + k-max.

    Layers 1-2 run ONCE (grid step 0) into the VMEM scratch `a2_ref`; only the
    layer-3 weight w3 is tiled across the ("arbitrary") grid axis, so no MXU/VPU
    work is repeated while the w3 stream still pipelines across the grid steps.
    """
    m = xn_ref.shape[0]

    @pl.when(pl.program_id(0) == 0)
    def _():
        n1 = jnp.dot(xn_ref[...], w1t_ref[...], preferred_element_type=F32) + b1_ref[...]
        e1 = jnp.dot(diff_ref[...], w1b_ref[...], preferred_element_type=F32)  # [k*m, H1]
        parts = []
        for kk in range(k):
            z = e1[kk * m:(kk + 1) * m] + n1
            parts.append((jnp.maximum(z, 0.0) * s1_ref[...] + t1_ref[...]).astype(BF16))
        a1 = jnp.concatenate(parts, axis=0)                                    # [k*m, H1]
        a2 = jnp.dot(a1, w2_ref[...], preferred_element_type=F32) + b2_ref[...]
        a2_ref[...] = (jnp.maximum(a2, 0.0) * s2_ref[...] + t2_ref[...]).astype(BF16)

    e3 = jnp.dot(a2_ref[...], w3_ref[...], preferred_element_type=F32)          # [k*m, nt]
    agg = e3[0:m]
    for kk in range(1, k):
        agg = jnp.maximum(agg, e3[kk * m:(kk + 1) * m])
    # bias / ReLU / folded BN deferred past the k-max (scale >= 0 here)
    o_ref[...] = (jnp.maximum(agg + b3_ref[...], 0.0) * s3_ref[...]
                  + t3_ref[...]).astype(o_ref.dtype)


def edge_conv2(x_nodes, diff, layers, *, k, n_tile=512):
    (w1t, w1b, b1, s1, t1), (w2, b2, s2, t2), (w3, b3, s3, t3) = layers
    M, C = x_nodes.shape
    H1, H2, N = w1t.shape[1], w2.shape[1], w3.shape[1]
    assert N % n_tile == 0
    grid = (N // n_tile,)
    return pl.pallas_call(
        functools.partial(_conv2_kernel, k=k),
        out_shape=jax.ShapeDtypeStruct((M, N), F32),
        grid=grid,
        in_specs=[
            pl.BlockSpec((M, C), lambda j: (0, 0)),
            pl.BlockSpec((k * M, C), lambda j: (0, 0)),
            pl.BlockSpec((C, H1), lambda j: (0, 0)),
            pl.BlockSpec((C, H1), lambda j: (0, 0)),
            pl.BlockSpec((1, H1), lambda j: (0, 0)),
            pl.BlockSpec((1, H1), lambda j: (0, 0)),
            pl.BlockSpec((1, H1), lambda j: (0, 0)),
            pl.BlockSpec((H1, H2), lambda j: (0, 0)),
            pl.BlockSpec((1, H2), lambda j: (0, 0)),
            pl.BlockSpec((1, H2), lambda j: (0, 0)),
            pl.BlockSpec((1, H2), lambda j: (0, 0)),
            pl.BlockSpec((H2, n_tile), lambda j: (0, j)),
            pl.BlockSpec((1, n_tile), lambda j: (0, j)),
            pl.BlockSpec((1, n_tile), lambda j: (0, j)),
            pl.BlockSpec((1, n_tile), lambda j: (0, j)),
        ],
        out_specs=pl.BlockSpec((M, n_tile), lambda j: (0, j)),
        scratch_shapes=[pltpu.VMEM((k * M, H2), BF16)],
        compiler_params=pltpu.CompilerParams(
            # "arbitrary": layers 1-2 run only on grid step 0 and the a2 scratch is
            # carried across steps, so the axis must be sequential.  (On v7x this
            # trades 2-TC parallelism of conv2 for not recomputing layers 1-2; the
            # duplicated work would dominate on single-TC v5e/v6e.)
            dimension_semantics=("arbitrary",),
            vmem_limit_bytes=VMEM_LIMIT,
        ),
    )(x_nodes, diff, w1t, w1b, b1, s1, t1, w2, b2, s2, t2, w3, b3, s3, t3)


def _lin1_pool_kernel(x1_ref, x2_ref, wa_ref, wb_ref, b_ref, s_ref, t_ref, o_ref,
                      *, num_graphs):
    """lin1 on cat([x1,x2]) (weight rows pre-split) with fused global_max_pool."""
    acc = (jnp.dot(x1_ref[...].astype(BF16), wa_ref[...], preferred_element_type=F32)
           + jnp.dot(x2_ref[...].astype(BF16), wb_ref[...], preferred_element_type=F32))
    p = acc.shape[0] // num_graphs
    # pool first, then bias / ReLU / folded BN (scale >= 0), single lane-dense store
    pooled = jnp.concatenate(
        [jnp.max(acc[g * p:(g + 1) * p], axis=0, keepdims=True)
         for g in range(num_graphs)], axis=0)                              # [B, nt]
    o_ref[...] = (jnp.maximum(pooled + b_ref[...], 0.0) * s_ref[...]
                  + t_ref[...]).astype(o_ref.dtype)


def lin1_global_pool(x1, x2, layer, *, num_graphs, n_tile=512):
    wa, wb, b, s, t = layer
    M, K1 = x1.shape
    K2 = x2.shape[1]
    N = wa.shape[1]
    assert N % n_tile == 0
    grid = (N // n_tile,)
    return pl.pallas_call(
        functools.partial(_lin1_pool_kernel, num_graphs=num_graphs),
        out_shape=jax.ShapeDtypeStruct((num_graphs, N), F32),
        grid=grid,
        in_specs=[
            pl.BlockSpec((M, K1), lambda j: (0, 0)),
            pl.BlockSpec((M, K2), lambda j: (0, 0)),
            pl.BlockSpec((K1, n_tile), lambda j: (0, j)),
            pl.BlockSpec((K2, n_tile), lambda j: (0, j)),
            pl.BlockSpec((1, n_tile), lambda j: (0, j)),
            pl.BlockSpec((1, n_tile), lambda j: (0, j)),
            pl.BlockSpec((1, n_tile), lambda j: (0, j)),
        ],
        out_specs=pl.BlockSpec((num_graphs, n_tile), lambda j: (0, j)),
        compiler_params=pltpu.CompilerParams(
            dimension_semantics=("parallel",),
            vmem_limit_bytes=VMEM_LIMIT,
        ),
    )(x1, x2, wa, wb, b, s, t)


def _head_kernel(g_ref, w1_ref, b1_ref, s1_ref, t1_ref,
                 w2r_ref, b2_ref, s2_ref, t2_ref, wf_ref, bf_ref, o_ref, acc_ref):
    """MLP(2048->1024) tiled over its output columns; MLP(1024->512) -> Lin(512, Cpad)
    run as the last-step epilogue.  Dropout layers are identity at inference."""
    j = pl.program_id(0)

    @pl.when(j == 0)
    def _():
        acc_ref[...] = jnp.zeros_like(acc_ref)

    a1 = (jnp.dot(g_ref[...].astype(BF16), w1_ref[...], preferred_element_type=F32)
          + b1_ref[...])
    a1 = jnp.maximum(a1, 0.0) * s1_ref[...] + t1_ref[...]                   # [B, n_tile]
    acc_ref[...] += jnp.dot(a1.astype(BF16), w2r_ref[...], preferred_element_type=F32)

    @pl.when(j == pl.num_programs(0) - 1)
    def _():
        a2 = jnp.maximum(acc_ref[...] + b2_ref[...], 0.0) * s2_ref[...] + t2_ref[...]
        out = jnp.dot(a2.astype(BF16), wf_ref[...], preferred_element_type=F32) + bf_ref[...]
        o_ref[...] = out.astype(o_ref.dtype)


def head_chain(g, head1, head2, final, *, n_tile=512):
    w1, b1, s1, t1 = head1
    w2, b2, s2, t2 = head2
    wf, bf = final
    B, K1 = g.shape
    N1 = w1.shape[1]          # 1024
    H2 = w2.shape[1]          # 512
    NF = wf.shape[1]          # 128 (padded num_classes)
    assert N1 % n_tile == 0
    grid = (N1 // n_tile,)
    return pl.pallas_call(
        _head_kernel,
        out_shape=jax.ShapeDtypeStruct((B, NF), F32),
        grid=grid,
        in_specs=[
            pl.BlockSpec((B, K1), lambda j: (0, 0)),
            pl.BlockSpec((K1, n_tile), lambda j: (0, j)),
            pl.BlockSpec((1, n_tile), lambda j: (0, j)),
            pl.BlockSpec((1, n_tile), lambda j: (0, j)),
            pl.BlockSpec((1, n_tile), lambda j: (0, j)),
            pl.BlockSpec((n_tile, H2), lambda j: (j, 0)),
            pl.BlockSpec((1, H2), lambda j: (0, 0)),
            pl.BlockSpec((1, H2), lambda j: (0, 0)),
            pl.BlockSpec((1, H2), lambda j: (0, 0)),
            pl.BlockSpec((H2, NF), lambda j: (0, 0)),
            pl.BlockSpec((1, NF), lambda j: (0, 0)),
        ],
        out_specs=pl.BlockSpec((B, NF), lambda j: (0, 0)),
        scratch_shapes=[pltpu.VMEM((B, H2), F32)],
        compiler_params=pltpu.CompilerParams(
            dimension_semantics=("arbitrary",),
            vmem_limit_bytes=VMEM_LIMIT,
        ),
    )(g, w1, b1, s1, t1, w2, b2, s2, t2, wf, bf)


# ----------------------------- plain-JAX glue -----------------------------

def knn_indices(x, k):
    # x: [B, P, C]; self-edge included (distance 0), matching PyG knn(x, x, k).
    sq = jnp.sum(x * x, axis=-1)                                       # [B, P]
    d = sq[:, :, None] - 2.0 * jnp.einsum("bpc,bqc->bpq", x, x) + sq[:, None, :]
    _, idx = jax.lax.top_k(-d, k)                                      # [B, P, k]
    return idx


def edge_diff(x, k):
    """x: [B, P, C] (f32) -> x_nodes [B*P, C] bf16, diff [k*B*P, C] bf16 (k-major rows)."""
    B, P, C = x.shape
    idx = knn_indices(x, k)                                            # [B, P, k]
    x_j = jax.vmap(lambda xb, ib: xb[ib])(x, idx)                      # [B, P, k, C]
    diff = x_j - x[:, :, None, :]                                      # [B, P, k, C]
    diff = jnp.transpose(diff, (2, 0, 1, 3)).reshape(k * B * P, C)     # row = kk*B*P + node
    return x.reshape(B * P, C).astype(BF16), diff.astype(BF16)


def dynamic_model_forward(params, x, pos, *, topk, num_classes):
    B, P, _ = x.shape
    # conv1 (+ pos_enc MLP fused into the same kernel)
    xn, diff = edge_diff(x, topk)
    x1 = edge_conv1_with_pos(xn, diff, params["conv1"],
                             pos.reshape(B * P, 2), params["pos_enc"],
                             k=topk)                                   # [B*P, 512] f32
    # conv2 (knn in feature space of x1)
    xn2, diff2 = edge_diff(x1.reshape(B, P, x1.shape[-1]), topk)
    x2 = edge_conv2(xn2, diff2, params["conv2"], k=topk)               # [B*P, 1024] f32
    # lin1 on cat([x1, x2]) + global_max_pool, concat done via split weight in-kernel
    g = lin1_global_pool(x1, x2, params["lin1"], num_graphs=B)         # [B, 2048] f32
    # head chain (Dropout(0.5) layers are identity at inference)
    out = head_chain(g, params["head1"], params["head2"], params["final"])
    return out[:, :num_classes]                                        # [B, num_classes]


# ----------------------------- parameter init -----------------------------

def _bn_scale_shift(n):
    # BatchNorm1d eval defaults: gamma=1, beta=0, running_mean=0, running_var=1
    s = jnp.full((1, n), 1.0 / jnp.sqrt(1.0 + BN_EPS), F32)
    t = jnp.zeros((1, n), F32)
    return s, t


def _init_linear(key, fan_in, fan_out):
    key, kw = jax.random.split(key)
    w = (jax.random.normal(kw, (fan_in, fan_out), F32) / jnp.sqrt(fan_in)).astype(BF16)
    b = jnp.zeros((1, fan_out), F32)
    return key, w, b


def _init_mlp_layer(key, fan_in, fan_out):
    key, w, b = _init_linear(key, fan_in, fan_out)
    s, t = _bn_scale_shift(fan_out)
    return key, (w, b, s, t)


def _init_edge_layer(key, c_in, c_out):
    # First layer of an edge-conv MLP: split the [2*c_in, c_out] weight into
    # W_top (rows for x_i) and W_bot (rows for x_j - x_i).
    key, w, b = _init_linear(key, 2 * c_in, c_out)
    s, t = _bn_scale_shift(c_out)
    return key, (w[:c_in], w[c_in:], b, s, t)


def _init_lin1(key, c1, c2, n_out):
    # lin1 acts on torch.cat([x1, x2], dim=1); split the weight rows so the concat
    # never has to be materialized (wa for x1 rows, wb for x2 rows).
    key, w, b = _init_linear(key, c1 + c2, n_out)
    s, t = _bn_scale_shift(n_out)
    return key, (w[:c1], w[c1:], b, s, t)


def init_params(key, in_channels, num_classes):
    p = {}
    key, p["conv1"] = _init_edge_layer(key, in_channels, 512)
    key, pe1 = _init_mlp_layer(key, 2, 128)
    key, pe2 = _init_mlp_layer(key, 128, 512)
    p["pos_enc"] = (pe1, pe2)
    key, c2l1 = _init_edge_layer(key, 512, 512)
    key, c2l2 = _init_mlp_layer(key, 512, 1024)
    key, c2l3 = _init_mlp_layer(key, 1024, 1024)
    p["conv2"] = (c2l1, c2l2, c2l3)
    key, p["lin1"] = _init_lin1(key, 512, 1024, 2048)
    key, p["head1"] = _init_mlp_layer(key, 2048, 1024)
    key, p["head2"] = _init_mlp_layer(key, 1024, 512)
    # Final Lin(512, num_classes) zero-padded to a lane-dense 128-wide output.
    key, wf, bf = _init_linear(key, 512, num_classes)
    wf_pad = jnp.zeros((512, 128), BF16).at[:, :num_classes].set(wf)
    bf_pad = jnp.zeros((1, 128), F32).at[:, :num_classes].set(bf)
    p["final"] = (wf_pad, bf_pad)
    return p


# ----------------------------- main -----------------------------

if __name__ == "__main__":
    # args: topk=4, aggr='max', cat=False (-> in_channels=1024), with_pos=True, num_classes=10
    TOPK, IN_CH, NUM_CLASSES = 4, 1024, 10
    B, P = 2, 16                                    # 2 graphs x 16 points = N = 32 nodes

    key = jax.random.PRNGKey(0)
    key, kx, kp = jax.random.split(key, 3)
    x = jax.random.normal(kx, (B, P, IN_CH), F32)   # data.x_cnn (flattened: [32, 1024])
    pos = jax.random.normal(kp, (B, P, 2), F32)     # data.pos   (flattened: [32, 2])
    # data.batch is implicit in the [B, P, ...] layout: batch = repeat(arange(B), P)

    params = init_params(jax.random.PRNGKey(42), IN_CH, NUM_CLASSES)

    fwd = jax.jit(functools.partial(dynamic_model_forward,
                                    topk=TOPK, num_classes=NUM_CLASSES))
    out = fwd(params, x, pos)
    jax.block_until_ready(out)
    assert out.shape == (B, NUM_CLASSES) and out.dtype == F32
    print("KERNEL_OK")
</pallas_src>

<mosaic_0001>
module attributes {stable_mosaic.version = 11 : i64} {
  func.func @_conv1_kernel(%arg0: i32, %arg1: memref<32x1024xbf16, #tpu.memory_space<vmem>>, %arg2: memref<128x1024xbf16, #tpu.memory_space<vmem>>, %arg3: memref<1024x256xbf16, #tpu.memory_space<vmem>>, %arg4: memref<1024x256xbf16, #tpu.memory_space<vmem>>, %arg5: memref<1x256xf32, #tpu.memory_space<vmem>>, %arg6: memref<1x256xf32, #tpu.memory_space<vmem>>, %arg7: memref<1x256xf32, #tpu.memory_space<vmem>>, %arg8: memref<32x2xf32, #tpu.memory_space<vmem>>, %arg9: memref<2x128xbf16, #tpu.memory_space<vmem>>, %arg10: memref<1x128xf32, #tpu.memory_space<vmem>>, %arg11: memref<1x128xf32, #tpu.memory_space<vmem>>, %arg12: memref<1x128xf32, #tpu.memory_space<vmem>>, %arg13: memref<128x256xbf16, #tpu.memory_space<vmem>>, %arg14: memref<1x256xf32, #tpu.memory_space<vmem>>, %arg15: memref<1x256xf32, #tpu.memory_space<vmem>>, %arg16: memref<1x256xf32, #tpu.memory_space<vmem>>, %arg17: memref<32x256xf32, #tpu.memory_space<vmem>>) attributes {dimension_semantics = [#tpu.dimension_semantics<parallel>], iteration_bounds = array<i64: 2>, scalar_prefetch = 0 : i64, scratch_operands = 0 : i64, tpu.core_type = #tpu.core_type<tc>, window_params = [{pipeline_mode = #tpu.pipeline_mode<synchronous>, transform_indices = @transform_0, window_bounds = array<i64: 32, 1024>}, {pipeline_mode = #tpu.pipeline_mode<synchronous>, transform_indices = @transform_1, window_bounds = array<i64: 128, 1024>}, {transform_indices = @transform_2, window_bounds = array<i64: 1024, 256>}, {transform_indices = @transform_3, window_bounds = array<i64: 1024, 256>}, {transform_indices = @transform_4, window_bounds = array<i64: 1, 256>}, {transform_indices = @transform_5, window_bounds = array<i64: 1, 256>}, {transform_indices = @transform_6, window_bounds = array<i64: 1, 256>}, {pipeline_mode = #tpu.pipeline_mode<synchronous>, transform_indices = @transform_7, window_bounds = array<i64: 32, 2>}, {pipeline_mode = #tpu.pipeline_mode<synchronous>, transform_indices = @transform_8, window_bounds = array<i64: 2, 128>}, {pipeline_mode = #tpu.pipeline_mode<synchronous>, transform_indices = @transform_9, window_bounds = array<i64: 1, 128>}, {pipeline_mode = #tpu.pipeline_mode<synchronous>, transform_indices = @transform_10, window_bounds = array<i64: 1, 128>}, {pipeline_mode = #tpu.pipeline_mode<synchronous>, transform_indices = @transform_11, window_bounds = array<i64: 1, 128>}, {transform_indices = @transform_12, window_bounds = array<i64: 128, 256>}, {transform_indices = @transform_13, window_bounds = array<i64: 1, 256>}, {transform_indices = @transform_14, window_bounds = array<i64: 1, 256>}, {transform_indices = @transform_15, window_bounds = array<i64: 1, 256>}, {transform_indices = @transform_16, window_bounds = array<i64: 32, 256>}]} {
    %c0 = arith.constant 0 : index
    %c0_0 = arith.constant 0 : index
    %0 = vector.load %arg2[%c0, %c0_0] : memref<128x1024xbf16, #tpu.memory_space<vmem>>, vector<128x1024xbf16>
    %c0_1 = arith.constant 0 : index
    %c0_2 = arith.constant 0 : index
    %1 = vector.load %arg4[%c0_1, %c0_2] : memref<1024x256xbf16, #tpu.memory_space<vmem>>, vector<1024x256xbf16>
    %cst = arith.constant dense<0.000000e+00> : vector<128x256xf32>
    %2 = tpu.matmul %0, %1, %cst {dimension_numbers = #tpu.dot_dimension_numbers<[1], [0], [0], [1], [0, 0, 1, 1], [], []>} : vector<128x1024xbf16>, vector<1024x256xbf16>, vector<128x256xf32> -> vector<128x256xf32>
    %3 = vector.extract_strided_slice %2 {offsets = [0, 0], sizes = [32, 256], strides = [1, 1]} : vector<128x256xf32> to vector<32x256xf32>
    %4 = vector.extract_strided_slice %2 {offsets = [32, 0], sizes = [32, 256], strides = [1, 1]} : vector<128x256xf32> to vector<32x256xf32>
    %5 = arith.maximumf %3, %4 : vector<32x256xf32>
    %6 = vector.extract_strided_slice %2 {offsets = [64, 0], sizes = [32, 256], strides = [1, 1]} : vector<128x256xf32> to vector<32x256xf32>
    %7 = arith.maximumf %5, %6 : vector<32x256xf32>
    %8 = vector.extract_strided_slice %2 {offsets = [96, 0], sizes = [32, 256], strides = [1, 1]} : vector<128x256xf32> to vector<32x256xf32>
    %9 = arith.maximumf %7, %8 : vector<32x256xf32>
    %c0_3 = arith.constant 0 : index
    %c0_4 = arith.constant 0 : index
    %10 = vector.load %arg1[%c0_3, %c0_4] : memref<32x1024xbf16, #tpu.memory_space<vmem>>, vector<32x1024xbf16>
    %c0_5 = arith.constant 0 : index
    %c0_6 = arith.constant 0 : index
    %11 = vector.load %arg3[%c0_5, %c0_6] : memref<1024x256xbf16, #tpu.memory_space<vmem>>, vector<1024x256xbf16>
    %cst_7 = arith.constant dense<0.000000e+00> : vector<32x256xf32>
    %12 = tpu.matmul %10, %11, %cst_7 {dimension_numbers = #tpu.dot_dimension_numbers<[1], [0], [0], [1], [0, 0, 1, 1], [], []>} : vector<32x1024xbf16>, vector<1024x256xbf16>, vector<32x256xf32> -> vector<32x256xf32>
    %13 = arith.addf %9, %12 : vector<32x256xf32>
    %c0_8 = arith.constant 0 : index
    %c0_9 = arith.constant 0 : index
    %14 = vector.load %arg5[%c0_8, %c0_9] : memref<1x256xf32, #tpu.memory_space<vmem>>, vector<1x256xf32>
    %15 = vector.broadcast %14 : vector<1x256xf32> to vector<32x256xf32>
    %16 = arith.addf %13, %15 : vector<32x256xf32>
    %cst_10 = arith.constant 0.000000e+00 : f32
    %17 = vector.broadcast %cst_10 : f32 to vector<32x256xf32>
    %18 = arith.maximumf %16, %17 : vector<32x256xf32>
    %c0_11 = arith.constant 0 : index
    %c0_12 = arith.constant 0 : index
    %19 = vector.load %arg6[%c0_11, %c0_12] : memref<1x256xf32, #tpu.memory_space<vmem>>, vector<1x256xf32>
    %20 = vector.broadcast %19 : vector<1x256xf32> to vector<32x256xf32>
    %21 = arith.mulf %18, %20 : vector<32x256xf32>
    %c0_13 = arith.constant 0 : index
    %c0_14 = arith.constant 0 : index
    %22 = vector.load %arg7[%c0_13, %c0_14] : memref<1x256xf32, #tpu.memory_space<vmem>>, vector<1x256xf32>
    %23 = vector.broadcast %22 : vector<1x256xf32> to vector<32x256xf32>
    %24 = arith.addf %21, %23 : vector<32x256xf32>
    %c0_15 = arith.constant 0 : index
    %c0_16 = arith.constant 0 : index
    %25 = vector.load %arg8[%c0_15, %c0_16] : memref<32x2xf32, #tpu.memory_space<vmem>>, vector<32x2xf32>
    %26 = vector.extract_strided_slice %25 {offsets = [0, 0], sizes = [32, 1], strides = [1, 1]} : vector<32x2xf32> to vector<32x1xf32>
    %c0_17 = arith.constant 0 : index
    %c0_18 = arith.constant 0 : index
    %27 = vector.load %arg9[%c0_17, %c0_18] : memref<2x128xbf16, #tpu.memory_space<vmem>>, vector<1x128xbf16>
    %28 = arith.extf %27 : vector<1x128xbf16> to vector<1x128xf32>
    %29 = vector.broadcast %26 : vector<32x1xf32> to vector<32x128xf32>
    %30 = vector.broadcast %28 : vector<1x128xf32> to vector<32x128xf32>
    %31 = arith.mulf %29, %30 : vector<32x128xf32>
    %32 = vector.extract_strided_slice %25 {offsets = [0, 1], sizes = [32, 1], strides = [1, 1]} : vector<32x2xf32> to vector<32x1xf32>
    %c1 = arith.constant 1 : index
    %c0_19 = arith.constant 0 : index
    %33 = vector.load %arg9[%c1, %c0_19] : memref<2x128xbf16, #tpu.memory_space<vmem>>, vector<1x128xbf16>
    %34 = arith.extf %33 : vector<1x128xbf16> to vector<1x128xf32>
    %35 = vector.broadcast %32 : vector<32x1xf32> to vector<32x128xf32>
    %36 = vector.broadcast %34 : vector<1x128xf32> to vector<32x128xf32>
    %37 = arith.mulf %35, %36 : vector<32x128xf32>
    %38 = arith.addf %31, %37 : vector<32x128xf32>
    %c0_20 = arith.constant 0 : index
    %c0_21 = arith.constant 0 : index
    %39 = vector.load %arg10[%c0_20, %c0_21] : memref<1x128xf32, #tpu.memory_space<vmem>>, vector<1x128xf32>
    %40 = vector.broadcast %39 : vector<1x128xf32> to vector<32x128xf32>
    %41 = arith.addf %38, %40 : vector<32x128xf32>
    %cst_22 = arith.constant 0.000000e+00 : f32
    %42 = vector.broadcast %cst_22 : f32 to vector<32x128xf32>
    %43 = arith.maximumf %41, %42 : vector<32x128xf32>
    %c0_23 = arith.constant 0 : index
    %c0_24 = arith.constant 0 : index
    %44 = vector.load %arg11[%c0_23, %c0_24] : memref<1x128xf32, #tpu.memory_space<vmem>>, vector<1x128xf32>
    %45 = vector.broadcast %44 : vector<1x128xf32> to vector<32x128xf32>
    %46 = arith.mulf %43, %45 : vector<32x128xf32>
    %c0_25 = arith.constant 0 : index
    %c0_26 = arith.constant 0 : index
    %47 = vector.load %arg12[%c0_25, %c0_26] : memref<1x128xf32, #tpu.memory_space<vmem>>, vector<1x128xf32>
    %48 = vector.broadcast %47 : vector<1x128xf32> to vector<32x128xf32>
    %49 = arith.addf %46, %48 : vector<32x128xf32>
    %50 = arith.truncf %49 : vector<32x128xf32> to vector<32x128xbf16>
    %c0_27 = arith.constant 0 : index
    %c0_28 = arith.constant 0 : index
    %51 = vector.load %arg13[%c0_27, %c0_28] : memref<128x256xbf16, #tpu.memory_space<vmem>>, vector<128x256xbf16>
    %cst_29 = arith.constant dense<0.000000e+00> : vector<32x256xf32>
    %52 = tpu.matmul %50, %51, %cst_29 {dimension_numbers = #tpu.dot_dimension_numbers<[1], [0], [0], [1], [0, 0, 1, 1], [], []>} : vector<32x128xbf16>, vector<128x256xbf16>, vector<32x256xf32> -> vector<32x256xf32>
    %c0_30 = arith.constant 0 : index
    %c0_31 = arith.constant 0 : index
    %53 = vector.load %arg14[%c0_30, %c0_31] : memref<1x256xf32, #tpu.memory_space<vmem>>, vector<1x256xf32>
    %54 = vector.broadcast %53 : vector<1x256xf32> to vector<32x256xf32>
    %55 = arith.addf %52, %54 : vector<32x256xf32>
    %cst_32 = arith.constant 0.000000e+00 : f32
    %56 = vector.broadcast %cst_32 : f32 to vector<32x256xf32>
    %57 = arith.maximumf %55, %56 : vector<32x256xf32>
    %c0_33 = arith.constant 0 : index
    %c0_34 = arith.constant 0 : index
    %58 = vector.load %arg15[%c0_33, %c0_34] : memref<1x256xf32, #tpu.memory_space<vmem>>, vector<1x256xf32>
    %59 = vector.broadcast %58 : vector<1x256xf32> to vector<32x256xf32>
    %60 = arith.mulf %57, %59 : vector<32x256xf32>
    %c0_35 = arith.constant 0 : index
    %c0_36 = arith.constant 0 : index
    %61 = vector.load %arg16[%c0_35, %c0_36] : memref<1x256xf32, #tpu.memory_space<vmem>>, vector<1x256xf32>
    %62 = vector.broadcast %61 : vector<1x256xf32> to vector<32x256xf32>
    %63 = arith.addf %60, %62 : vector<32x256xf32>
    %64 = arith.addf %24, %63 : vector<32x256xf32>
    %c0_37 = arith.constant 0 : index
    %c0_38 = arith.constant 0 : index
    %65 = vector.load %arg17[%c0_37, %c0_38] : memref<32x256xf32, #tpu.memory_space<vmem>>, vector<32x256xf32>
    tpu.vector_store %arg17[%c0_37, %c0_38], %64 {strides = array<i32>} : memref<32x256xf32, #tpu.memory_space<vmem>>, vector<32x256xf32>,
    return
  }
  func.func @transform_0(%arg0: i32) -> (i32, i32) {
    %c0_i32 = arith.constant 0 : i32
    %c0_i32_0 = arith.constant 0 : i32
    %c0_i32_1 = arith.constant 0 : i32
    return %c0_i32, %c0_i32_0 : i32, i32
  }
  func.func @transform_1(%arg0: i32) -> (i32, i32) {
    %c0_i32 = arith.constant 0 : i32
    %c0_i32_0 = arith.constant 0 : i32
    %c0_i32_1 = arith.constant 0 : i32
    return %c0_i32, %c0_i32_0 : i32, i32
  }
  func.func @transform_2(%arg0: i32) -> (i32, i32) {
    %c0_i32 = arith.constant 0 : i32
    %c0_i32_0 = arith.constant 0 : i32
    return %c0_i32, %arg0 : i32, i32
  }
  func.func @transform_3(%arg0: i32) -> (i32, i32) {
    %c0_i32 = arith.constant 0 : i32
    %c0_i32_0 = arith.constant 0 : i32
    return %c0_i32, %arg0 : i32, i32
  }
  func.func @transform_4(%arg0: i32) -> (i32, i32) {
    %c0_i32 = arith.constant 0 : i32
    %c0_i32_0 = arith.constant 0 : i32
    return %c0_i32, %arg0 : i32, i32
  }
  func.func @transform_5(%arg0: i32) -> (i32, i32) {
    %c0_i32 = arith.constant 0 : i32
    %c0_i32_0 = arith.constant 0 : i32
    return %c0_i32, %arg0 : i32, i32
  }
  func.func @transform_6(%arg0: i32) -> (i32, i32) {
    %c0_i32 = arith.constant 0 : i32
    %c0_i32_0 = arith.constant 0 : i32
    return %c0_i32, %arg0 : i32, i32
  }
  func.func @transform_7(%arg0: i32) -> (i32, i32) {
    %c0_i32 = arith.constant 0 : i32
    %c0_i32_0 = arith.constant 0 : i32
    %c0_i32_1 = arith.constant 0 : i32
    return %c0_i32, %c0_i32_0 : i32, i32
  }
  func.func @transform_8(%arg0: i32) -> (i32, i32) {
    %c0_i32 = arith.constant 0 : i32
    %c0_i32_0 = arith.constant 0 : i32
    %c0_i32_1 = arith.constant 0 : i32
    return %c0_i32, %c0_i32_0 : i32, i32
  }
  func.func @transform_9(%arg0: i32) -> (i32, i32) {
    %c0_i32 = arith.constant 0 : i32
    %c0_i32_0 = arith.constant 0 : i32
    %c0_i32_1 = arith.constant 0 : i32
    return %c0_i32, %c0_i32_0 : i32, i32
  }
  func.func @transform_10(%arg0: i32) -> (i32, i32) {
    %c0_i32 = arith.constant 0 : i32
    %c0_i32_0 = arith.constant 0 : i32
    %c0_i32_1 = arith.constant 0 : i32
    return %c0_i32, %c0_i32_0 : i32, i32
  }
  func.func @transform_11(%arg0: i32) -> (i32, i32) {
    %c0_i32 = arith.constant 0 : i32
    %c0_i32_0 = arith.constant 0 : i32
    %c0_i32_1 = arith.constant 0 : i32
    return %c0_i32, %c0_i32_0 : i32, i32
  }
  func.func @transform_12(%arg0: i32) -> (i32, i32) {
    %c0_i32 = arith.constant 0 : i32
    %c0_i32_0 = arith.constant 0 : i32
    return %c0_i32, %arg0 : i32, i32
  }
  func.func @transform_13(%arg0: i32) -> (i32, i32) {
    %c0_i32 = arith.constant 0 : i32
    %c0_i32_0 = arith.constant 0 : i32
    return %c0_i32, %arg0 : i32, i32
  }
  func.func @transform_14(%arg0: i32) -> (i32, i32) {
    %c0_i32 = arith.constant 0 : i32
    %c0_i32_0 = arith.constant 0 : i32
    return %c0_i32, %arg0 : i32, i32
  }
  func.func @transform_15(%arg0: i32) -> (i32, i32) {
    %c0_i32 = arith.constant 0 : i32
    %c0_i32_0 = arith.constant 0 : i32
    return %c0_i32, %arg0 : i32, i32
  }
  func.func @transform_16(%arg0: i32) -> (i32, i32) {
    %c0_i32 = arith.constant 0 : i32
    %c0_i32_0 = arith.constant 0 : i32
    return %c0_i32, %arg0 : i32, i32
  }
}

module attributes {stable_mosaic.version = 11 : i64} {
  func.func @_conv2_kernel(%arg0: i32, %arg1: memref<32x512xbf16, #tpu.memory_space<vmem>>, %arg2: memref<128x512xbf16, #tpu.memory_space<vmem>>, %arg3: memref<512x512xbf16, #tpu.memory_space<vmem>>, %arg4: memref<512x512xbf16, #tpu.memory_space<vmem>>, %arg5: memref<1x512xf32, #tpu.memory_space<vmem>>, %arg6: memref<1x512xf32, #tpu.memory_space<vmem>>, %arg7: memref<1x512xf32, #tpu.memory_space<vmem>>, %arg8: memref<512x1024xbf16, #tpu.memory_space<vmem>>, %arg9: memref<1x1024xf32, #tpu.memory_space<vmem>>, %arg10: memref<1x1024xf32, #tpu.memory_space<vmem>>, %arg11: memref<1x1024xf32, #tpu.memory_space<vmem>>, %arg12: memref<1024x512xbf16, #tpu.memory_space<vmem>>, %arg13: memref<1x512xf32, #tpu.memory_space<vmem>>, %arg14: memref<1x512xf32, #tpu.memory_space<vmem>>, %arg15: memref<1x512xf32, #tpu.memory_space<vmem>>, %arg16: memref<32x512xf32, #tpu.memory_space<vmem>>, %arg17: memref<128x1024xbf16, #tpu.memory_space<vmem>>) attributes {dimension_semantics = [#tpu.dimension_semantics<arbitrary>], iteration_bounds = array<i64: 2>, scalar_prefetch = 0 : i64, scratch_operands = 1 : i64, tpu.core_type = #tpu.core_type<tc>, window_params = [{pipeline_mode = #tpu.pipeline_mode<synchronous>, transform_indices = @transform_0, window_bounds = array<i64: 32, 512>}, {pipeline_mode = #tpu.pipeline_mode<synchronous>, transform_indices = @transform_1, window_bounds = array<i64: 128, 512>}, {pipeline_mode = #tpu.pipeline_mode<synchronous>, transform_indices = @transform_2, window_bounds = array<i64: 512, 512>}, {pipeline_mode = #tpu.pipeline_mode<synchronous>, transform_indices = @transform_3, window_bounds = array<i64: 512, 512>}, {pipeline_mode = #tpu.pipeline_mode<synchronous>, transform_indices = @transform_4, window_bounds = array<i64: 1, 512>}, {pipeline_mode = #tpu.pipeline_mode<synchronous>, transform_indices = @transform_5, window_bounds = array<i64: 1, 512>}, {pipeline_mode = #tpu.pipeline_mode<synchronous>, transform_indices = @transform_6, window_bounds = array<i64: 1, 512>}, {pipeline_mode = #tpu.pipeline_mode<synchronous>, transform_indices = @transform_7, window_bounds = array<i64: 512, 1024>}, {pipeline_mode = #tpu.pipeline_mode<synchronous>, transform_indices = @transform_8, window_bounds = array<i64: 1, 1024>}, {pipeline_mode = #tpu.pipeline_mode<synchronous>, transform_indices = @transform_9, window_bounds = array<i64: 1, 1024>}, {pipeline_mode = #tpu.pipeline_mode<synchronous>, transform_indices = @transform_10, window_bounds = array<i64: 1, 1024>}, {transform_indices = @transform_11, window_bounds = array<i64: 1024, 512>}, {transform_indices = @transform_12, window_bounds = array<i64: 1, 512>}, {transform_indices = @transform_13, window_bounds = array<i64: 1, 512>}, {transform_indices = @transform_14, window_bounds = array<i64: 1, 512>}, {transform_indices = @transform_15, window_bounds = array<i64: 32, 512>}]} {
    %c0_i32 = arith.constant 0 : i32
    %0 = arith.cmpi eq, %arg0, %c0_i32 : i32
    %1 = arith.extui %0 : i1 to i32
    %c0_i32_0 = arith.constant 0 : i32
    %2 = arith.cmpi ne, %1, %c0_i32_0 : i32
    scf.if %2 {
      %c0_13 = arith.constant 0 : index
      %c0_14 = arith.constant 0 : index
      %25 = vector.load %arg1[%c0_13, %c0_14] : memref<32x512xbf16, #tpu.memory_space<vmem>>, vector<32x512xbf16>
      %c0_15 = arith.constant 0 : index
      %c0_16 = arith.constant 0 : index
      %26 = vector.load %arg3[%c0_15, %c0_16] : memref<512x512xbf16, #tpu.memory_space<vmem>>, vector<512x512xbf16>
      %cst_17 = arith.constant dense<0.000000e+00> : vector<32x512xf32>
      %27 = tpu.matmul %25, %26, %cst_17 {dimension_numbers = #tpu.dot_dimension_numbers<[1], [0], [0], [1], [0, 0, 1, 1], [], []>} : vector<32x512xbf16>, vector<512x512xbf16>, vector<32x512xf32> -> vector<32x512xf32>
      %c0_18 = arith.constant 0 : index
      %c0_19 = arith.constant 0 : index
      %28 = vector.load %arg5[%c0_18, %c0_19] : memref<1x512xf32, #tpu.memory_space<vmem>>, vector<1x512xf32>
      %29 = vector.broadcast %28 : vector<1x512xf32> to vector<32x512xf32>
      %30 = arith.addf %27, %29 : vector<32x512xf32>
      %c0_20 = arith.constant 0 : index
      %c0_21 = arith.constant 0 : index
      %31 = vector.load %arg2[%c0_20, %c0_21] : memref<128x512xbf16, #tpu.memory_space<vmem>>, vector<128x512xbf16>
      %c0_22 = arith.constant 0 : index
      %c0_23 = arith.constant 0 : index
      %32 = vector.load %arg4[%c0_22, %c0_23] : memref<512x512xbf16, #tpu.memory_space<vmem>>, vector<512x512xbf16>
      %cst_24 = arith.constant dense<0.000000e+00> : vector<128x512xf32>
      %33 = tpu.matmul %31, %32, %cst_24 {dimension_numbers = #tpu.dot_dimension_numbers<[1], [0], [0], [1], [0, 0, 1, 1], [], []>} : vector<128x512xbf16>, vector<512x512xbf16>, vector<128x512xf32> -> vector<128x512xf32>
      %34 = vector.extract_strided_slice %33 {offsets = [0, 0], sizes = [32, 512], strides = [1, 1]} : vector<128x512xf32> to vector<32x512xf32>
      %35 = arith.addf %34, %30 : vector<32x512xf32>
      %cst_25 = arith.constant 0.000000e+00 : f32
      %36 = vector.broadcast %cst_25 : f32 to vector<32x512xf32>
      %37 = arith.maximumf %35, %36 : vector<32x512xf32>
      %c0_26 = arith.constant 0 : index
      %c0_27 = arith.constant 0 : index
      %38 = vector.load %arg6[%c0_26, %c0_27] : memref<1x512xf32, #tpu.memory_space<vmem>>, vector<1x512xf32>
      %39 = vector.broadcast %38 : vector<1x512xf32> to vector<32x512xf32>
      %40 = arith.mulf %37, %39 : vector<32x512xf32>
      %c0_28 = arith.constant 0 : index
      %c0_29 = arith.constant 0 : index
      %41 = vector.load %arg7[%c0_28, %c0_29] : memref<1x512xf32, #tpu.memory_space<vmem>>, vector<1x512xf32>
      %42 = vector.broadcast %41 : vector<1x512xf32> to vector<32x512xf32>
      %43 = arith.addf %40, %42 : vector<32x512xf32>
      %44 = arith.truncf %43 : vector<32x512xf32> to vector<32x512xbf16>
      %45 = vector.extract_strided_slice %33 {offsets = [32, 0], sizes = [32, 512], strides = [1, 1]} : vector<128x512xf32> to vector<32x512xf32>
      %46 = arith.addf %45, %30 : vector<32x512xf32>
      %cst_30 = arith.constant 0.000000e+00 : f32
      %47 = vector.broadcast %cst_30 : f32 to vector<32x512xf32>
      %48 = arith.maximumf %46, %47 : vector<32x512xf32>
      %c0_31 = arith.constant 0 : index
      %c0_32 = arith.constant 0 : index
      %49 = vector.load %arg6[%c0_31, %c0_32] : memref<1x512xf32, #tpu.memory_space<vmem>>, vector<1x512xf32>
      %50 = vector.broadcast %49 : vector<1x512xf32> to vector<32x512xf32>
      %51 = arith.mulf %48, %50 : vector<32x512xf32>
      %c0_33 = arith.constant 0 : index
      %c0_34 = arith.constant 0 : index
      %52 = vector.load %arg7[%c0_33, %c0_34] : memref<1x512xf32, #tpu.memory_space<vmem>>, vector<1x512xf32>
      %53 = vector.broadcast %52 : vector<1x512xf32> to vector<32x512xf32>
      %54 = arith.addf %51, %53 : vector<32x512xf32>
      %55 = arith.truncf %54 : vector<32x512xf32> to vector<32x512xbf16>
      %56 = vector.extract_strided_slice %33 {offsets = [64, 0], sizes = [32, 512], strides = [1, 1]} : vector<128x512xf32> to vector<32x512xf32>
      %57 = arith.addf %56, %30 : vector<32x512xf32>
      %cst_35 = arith.constant 0.000000e+00 : f32
      %58 = vector.broadcast %cst_35 : f32 to vector<32x512xf32>
      %59 = arith.maximumf %57, %58 : vector<32x512xf32>
      %c0_36 = arith.constant 0 : index
      %c0_37 = arith.constant 0 : index
      %60 = vector.load %arg6[%c0_36, %c0_37] : memref<1x512xf32, #tpu.memory_space<vmem>>, vector<1x512xf32>
      %61 = vector.broadcast %60 : vector<1x512xf32> to vector<32x512xf32>
      %62 = arith.mulf %59, %61 : vector<32x512xf32>
      %c0_38 = arith.constant 0 : index
      %c0_39 = arith.constant 0 : index
      %63 = vector.load %arg7[%c0_38, %c0_39] : memref<1x512xf32, #tpu.memory_space<vmem>>, vector<1x512xf32>
      %64 = vector.broadcast %63 : vector<1x512xf32> to vector<32x512xf32>
      %65 = arith.addf %62, %64 : vector<32x512xf32>
      %66 = arith.truncf %65 : vector<32x512xf32> to vector<32x512xbf16>
      %67 = vector.extract_strided_slice %33 {offsets = [96, 0], sizes = [32, 512], strides = [1, 1]} : vector<128x512xf32> to vector<32x512xf32>
      %68 = arith.addf %67, %30 : vector<32x512xf32>
      %cst_40 = arith.constant 0.000000e+00 : f32
      %69 = vector.broadcast %cst_40 : f32 to vector<32x512xf32>
      %70 = arith.maximumf %68, %69 : vector<32x512xf32>
      %c0_41 = arith.constant 0 : index
      %c0_42 = arith.constant 0 : index
      %71 = vector.load %arg6[%c0_41, %c0_42] : memref<1x512xf32, #tpu.memory_space<vmem>>, vector<1x512xf32>
      %72 = vector.broadcast %71 : vector<1x512xf32> to vector<32x512xf32>
      %73 = arith.mulf %70, %72 : vector<32x512xf32>
      %c0_43 = arith.constant 0 : index
      %c0_44 = arith.constant 0 : index
      %74 = vector.load %arg7[%c0_43, %c0_44] : memref<1x512xf32, #tpu.memory_space<vmem>>, vector<1x512xf32>
      %75 = vector.broadcast %74 : vector<1x512xf32> to vector<32x512xf32>
      %76 = arith.addf %73, %75 : vector<32x512xf32>
      %77 = arith.truncf %76 : vector<32x512xf32> to vector<32x512xbf16>
      %78 = tpu.concatenate %44, %55, %66, %77 in 0 : vector<32x512xbf16>, vector<32x512xbf16>, vector<32x512xbf16>, vector<32x512xbf16> -> vector<128x512xbf16>
      %c0_45 = arith.constant 0 : index
      %c0_46 = arith.constant 0 : index
      %79 = vector.load %arg8[%c0_45, %c0_46] : memref<512x1024xbf16, #tpu.memory_space<vmem>>, vector<512x1024xbf16>
      %cst_47 = arith.constant dense<0.000000e+00> : vector<128x1024xf32>
      %80 = tpu.matmul %78, %79, %cst_47 {dimension_numbers = #tpu.dot_dimension_numbers<[1], [0], [0], [1], [0, 0, 1, 1], [], []>} : vector<128x512xbf16>, vector<512x1024xbf16>, vector<128x1024xf32> -> vector<128x1024xf32>
      %c0_48 = arith.constant 0 : index
      %c0_49 = arith.constant 0 : index
      %81 = vector.load %arg9[%c0_48, %c0_49] : memref<1x1024xf32, #tpu.memory_space<vmem>>, vector<1x1024xf32>
      %82 = vector.broadcast %81 : vector<1x1024xf32> to vector<128x1024xf32>
      %83 = arith.addf %80, %82 : vector<128x1024xf32>
      %cst_50 = arith.constant 0.000000e+00 : f32
      %84 = vector.broadcast %cst_50 : f32 to vector<128x1024xf32>
      %85 = arith.maximumf %83, %84 : vector<128x1024xf32>
      %c0_51 = arith.constant 0 : index
      %c0_52 = arith.constant 0 : index
      %86 = vector.load %arg10[%c0_51, %c0_52] : memref<1x1024xf32, #tpu.memory_space<vmem>>, vector<1x1024xf32>
      %87 = vector.broadcast %86 : vector<1x1024xf32> to vector<128x1024xf32>
      %88 = arith.mulf %85, %87 : vector<128x1024xf32>
      %c0_53 = arith.constant 0 : index
      %c0_54 = arith.constant 0 : index
      %89 = vector.load %arg11[%c0_53, %c0_54] : memref<1x1024xf32, #tpu.memory_space<vmem>>, vector<1x1024xf32>
      %90 = vector.broadcast %89 : vector<1x1024xf32> to vector<128x1024xf32>
      %91 = arith.addf %88, %90 : vector<128x1024xf32>
      %92 = arith.truncf %91 : vector<128x1024xf32> to vector<128x1024xbf16>
      %c0_55 = arith.constant 0 : index
      %c0_56 = arith.constant 0 : index
      %93 = vector.load %arg17[%c0_55, %c0_56] : memref<128x1024xbf16, #tpu.memory_space<vmem>>, vector<128x1024xbf16>
      tpu.vector_store %arg17[%c0_55, %c0_56], %92 {strides = array<i32>} : memref<128x1024xbf16, #tpu.memory_space<vmem>>, vector<128x1024xbf16>,
    } else {
    }
    %c0 = arith.constant 0 : index
    %c0_1 = arith.constant 0 : index
    %3 = vector.load %arg17[%c0, %c0_1] : memref<128x1024xbf16, #tpu.memory_space<vmem>>, vector<128x1024xbf16>
    %c0_2 = arith.constant 0 : index
    %c0_3 = arith.constant 0 : index
    %4 = vector.load %arg12[%c0_2, %c0_3] : memref<1024x512xbf16, #tpu.memory_space<vmem>>, vector<1024x512xbf16>
    %cst = arith.constant dense<0.000000e+00> : vector<128x512xf32>
    %5 = tpu.matmul %3, %4, %cst {dimension_numbers = #tpu.dot_dimension_numbers<[1], [0], [0], [1], [0, 0, 1, 1], [], []>} : vector<128x1024xbf16>, vector<1024x512xbf16>, vector<128x512xf32> -> vector<128x512xf32>
    %6 = vector.extract_strided_slice %5 {offsets = [0, 0], sizes = [32, 512], strides = [1, 1]} : vector<128x512xf32> to vector<32x512xf32>
    %7 = vector.extract_strided_slice %5 {offsets = [32, 0], sizes = [32, 512], strides = [1, 1]} : vector<128x512xf32> to vector<32x512xf32>
    %8 = arith.maximumf %6, %7 : vector<32x512xf32>
    %9 = vector.extract_strided_slice %5 {offsets = [64, 0], sizes = [32, 512], strides = [1, 1]} : vector<128x512xf32> to vector<32x512xf32>
    %10 = arith.maximumf %8, %9 : vector<32x512xf32>
    %11 = vector.extract_strided_slice %5 {offsets = [96, 0], sizes = [32, 512], strides = [1, 1]} : vector<128x512xf32> to vector<32x512xf32>
    %12 = arith.maximumf %10, %11 : vector<32x512xf32>
    %c0_4 = arith.constant 0 : index
    %c0_5 = arith.constant 0 : index
    %13 = vector.load %arg13[%c0_4, %c0_5] : memref<1x512xf32, #tpu.memory_space<vmem>>, vector<1x512xf32>
    %14 = vector.broadcast %13 : vector<1x512xf32> to vector<32x512xf32>
    %15 = arith.addf %12, %14 : vector<32x512xf32>
    %cst_6 = arith.constant 0.000000e+00 : f32
    %16 = vector.broadcast %cst_6 : f32 to vector<32x512xf32>
    %17 = arith.maximumf %15, %16 : vector<32x512xf32>
    %c0_7 = arith.constant 0 : index
    %c0_8 = arith.constant 0 : index
    %18 = vector.load %arg14[%c0_7, %c0_8] : memref<1x512xf32, #tpu.memory_space<vmem>>, vector<1x512xf32>
    %19 = vector.broadcast %18 : vector<1x512xf32> to vector<32x512xf32>
    %20 = arith.mulf %17, %19 : vector<32x512xf32>
    %c0_9 = arith.constant 0 : index
    %c0_10 = arith.constant 0 : index
    %21 = vector.load %arg15[%c0_9, %c0_10] : memref<1x512xf32, #tpu.memory_space<vmem>>, vector<1x512xf32>
    %22 = vector.broadcast %21 : vector<1x512xf32> to vector<32x512xf32>
    %23 = arith.addf %20, %22 : vector<32x512xf32>
    %c0_11 = arith.constant 0 : index
    %c0_12 = arith.constant 0 : index
    %24 = vector.load %arg16[%c0_11, %c0_12] : memref<32x512xf32, #tpu.memory_space<vmem>>, vector<32x512xf32>
    tpu.vector_store %arg16[%c0_11, %c0_12], %23 {strides = array<i32>} : memref<32x512xf32, #tpu.memory_space<vmem>>, vector<32x512xf32>,
    return
  }
  func.func @transform_0(%arg0: i32) -> (i32, i32) {
    %c0_i32 = arith.constant 0 : i32
    %c0_i32_0 = arith.constant 0 : i32
    %c0_i32_1 = arith.constant 0 : i32
    return %c0_i32, %c0_i32_0 : i32, i32
  }
  func.func @transform_1(%arg0: i32) -> (i32, i32) {
    %c0_i32 = arith.constant 0 : i32
    %c0_i32_0 = arith.constant 0 : i32
    %c0_i32_1 = arith.constant 0 : i32
    return %c0_i32, %c0_i32_0 : i32, i32
  }
  func.func @transform_2(%arg0: i32) -> (i32, i32) {
    %c0_i32 = arith.constant 0 : i32
    %c0_i32_0 = arith.constant 0 : i32
    %c0_i32_1 = arith.constant 0 : i32
    return %c0_i32, %c0_i32_0 : i32, i32
  }
  func.func @transform_3(%arg0: i32) -> (i32, i32) {
    %c0_i32 = arith.constant 0 : i32
    %c0_i32_0 = arith.constant 0 : i32
    %c0_i32_1 = arith.constant 0 : i32
    return %c0_i32, %c0_i32_0 : i32, i32
  }
  func.func @transform_4(%arg0: i32) -> (i32, i32) {
    %c0_i32 = arith.constant 0 : i32
    %c0_i32_0 = arith.constant 0 : i32
    %c0_i32_1 = arith.constant 0 : i32
    return %c0_i32, %c0_i32_0 : i32, i32
  }
  func.func @transform_5(%arg0: i32) -> (i32, i32) {
    %c0_i32 = arith.constant 0 : i32
    %c0_i32_0 = arith.constant 0 : i32
    %c0_i32_1 = arith.constant 0 : i32
    return %c0_i32, %c0_i32_0 : i32, i32
  }
  func.func @transform_6(%arg0: i32) -> (i32, i32) {
    %c0_i32 = arith.constant 0 : i32
    %c0_i32_0 = arith.constant 0 : i32
    %c0_i32_1 = arith.constant 0 : i32
    return %c0_i32, %c0_i32_0 : i32, i32
  }
  func.func @transform_7(%arg0: i32) -> (i32, i32) {
    %c0_i32 = arith.constant 0 : i32
    %c0_i32_0 = arith.constant 0 : i32
    %c0_i32_1 = arith.constant 0 : i32
    return %c0_i32, %c0_i32_0 : i32, i32
  }
  func.func @transform_8(%arg0: i32) -> (i32, i32) {
    %c0_i32 = arith.constant 0 : i32
    %c0_i32_0 = arith.constant 0 : i32
    %c0_i32_1 = arith.constant 0 : i32
    return %c0_i32, %c0_i32_0 : i32, i32
  }
  func.func @transform_9(%arg0: i32) -> (i32, i32) {
    %c0_i32 = arith.constant 0 : i32
    %c0_i32_0 = arith.constant 0 : i32
    %c0_i32_1 = arith.constant 0 : i32
    return %c0_i32, %c0_i32_0 : i32, i32
  }
  func.func @transform_10(%arg0: i32) -> (i32, i32) {
    %c0_i32 = arith.constant 0 : i32
    %c0_i32_0 = arith.constant 0 : i32
    %c0_i32_1 = arith.constant 0 : i32
    return %c0_i32, %c0_i32_0 : i32, i32
  }
  func.func @transform_11(%arg0: i32) -> (i32, i32) {
    %c0_i32 = arith.constant 0 : i32
    %c0_i32_0 = arith.constant 0 : i32
    return %c0_i32, %arg0 : i32, i32
  }
  func.func @transform_12(%arg0: i32) -> (i32, i32) {
    %c0_i32 = arith.constant 0 : i32
    %c0_i32_0 = arith.constant 0 : i32
    return %c0_i32, %arg0 : i32, i32
  }
  func.func @transform_13(%arg0: i32) -> (i32, i32) {
    %c0_i32 = arith.constant 0 : i32
    %c0_i32_0 = arith.constant 0 : i32
    return %c0_i32, %arg0 : i32, i32
  }
  func.func @transform_14(%arg0: i32) -> (i32, i32) {
    %c0_i32 = arith.constant 0 : i32
    %c0_i32_0 = arith.constant 0 : i32
    return %c0_i32, %arg0 : i32, i32
  }
  func.func @transform_15(%arg0: i32) -> (i32, i32) {
    %c0_i32 = arith.constant 0 : i32
    %c0_i32_0 = arith.constant 0 : i32
    return %c0_i32, %arg0 : i32, i32
  }
}

module attributes {stable_mosaic.version = 11 : i64} {
  func.func @_lin1_pool_kernel(%arg0: i32, %arg1: memref<32x512xf32, #tpu.memory_space<vmem>>, %arg2: memref<32x1024xf32, #tpu.memory_space<vmem>>, %arg3: memref<512x512xbf16, #tpu.memory_space<vmem>>, %arg4: memref<1024x512xbf16, #tpu.memory_space<vmem>>, %arg5: memref<1x512xf32, #tpu.memory_space<vmem>>, %arg6: memref<1x512xf32, #tpu.memory_space<vmem>>, %arg7: memref<1x512xf32, #tpu.memory_space<vmem>>, %arg8: memref<2x512xf32, #tpu.memory_space<vmem>>) attributes {dimension_semantics = [#tpu.dimension_semantics<parallel>], iteration_bounds = array<i64: 4>, scalar_prefetch = 0 : i64, scratch_operands = 0 : i64, tpu.core_type = #tpu.core_type<tc>, window_params = [{pipeline_mode = #tpu.pipeline_mode<synchronous>, transform_indices = @transform_0, window_bounds = array<i64: 32, 512>}, {pipeline_mode = #tpu.pipeline_mode<synchronous>, transform_indices = @transform_1, window_bounds = array<i64: 32, 1024>}, {transform_indices = @transform_2, window_bounds = array<i64: 512, 512>}, {transform_indices = @transform_3, window_bounds = array<i64: 1024, 512>}, {transform_indices = @transform_4, window_bounds = array<i64: 1, 512>}, {transform_indices = @transform_5, window_bounds = array<i64: 1, 512>}, {transform_indices = @transform_6, window_bounds = array<i64: 1, 512>}, {transform_indices = @transform_7, window_bounds = array<i64: 2, 512>}]} {
    %c0 = arith.constant 0 : index
    %c0_0 = arith.constant 0 : index
    %0 = vector.load %arg1[%c0, %c0_0] : memref<32x512xf32, #tpu.memory_space<vmem>>, vector<32x512xf32>
    %1 = arith.truncf %0 : vector<32x512xf32> to vector<32x512xbf16>
    %c0_1 = arith.constant 0 : index
    %c0_2 = arith.constant 0 : index
    %2 = vector.load %arg3[%c0_1, %c0_2] : memref<512x512xbf16, #tpu.memory_space<vmem>>, vector<512x512xbf16>
    %cst = arith.constant dense<0.000000e+00> : vector<32x512xf32>
    %3 = tpu.matmul %1, %2, %cst {dimension_numbers = #tpu.dot_dimension_numbers<[1], [0], [0], [1], [0, 0, 1, 1], [], []>} : vector<32x512xbf16>, vector<512x512xbf16>, vector<32x512xf32> -> vector<32x512xf32>
    %c0_3 = arith.constant 0 : index
    %c0_4 = arith.constant 0 : index
    %4 = vector.load %arg2[%c0_3, %c0_4] : memref<32x1024xf32, #tpu.memory_space<vmem>>, vector<32x1024xf32>
    %5 = arith.truncf %4 : vector<32x1024xf32> to vector<32x1024xbf16>
    %c0_5 = arith.constant 0 : index
    %c0_6 = arith.constant 0 : index
    %6 = vector.load %arg4[%c0_5, %c0_6] : memref<1024x512xbf16, #tpu.memory_space<vmem>>, vector<1024x512xbf16>
    %cst_7 = arith.constant dense<0.000000e+00> : vector<32x512xf32>
    %7 = tpu.matmul %5, %6, %cst_7 {dimension_numbers = #tpu.dot_dimension_numbers<[1], [0], [0], [1], [0, 0, 1, 1], [], []>} : vector<32x1024xbf16>, vector<1024x512xbf16>, vector<32x512xf32> -> vector<32x512xf32>
    %8 = arith.addf %3, %7 : vector<32x512xf32>
    %9 = vector.extract_strided_slice %8 {offsets = [0, 0], sizes = [16, 512], strides = [1, 1]} : vector<32x512xf32> to vector<16x512xf32>
    %cst_8 = arith.constant dense<0xFF800000> : vector<512xf32>
    %10 = vector.multi_reduction <maximumf>, %9, %cst_8 [0] : vector<16x512xf32> to vector<512xf32>
    %11 = vector.shape_cast %10 : vector<512xf32> to vector<1x512xf32>
    %12 = vector.extract_strided_slice %8 {offsets = [16, 0], sizes = [16, 512], strides = [1, 1]} : vector<32x512xf32> to vector<16x512xf32>
    %cst_9 = arith.constant dense<0xFF800000> : vector<512xf32>
    %13 = vector.multi_reduction <maximumf>, %12, %cst_9 [0] : vector<16x512xf32> to vector<512xf32>
    %14 = vector.shape_cast %13 : vector<512xf32> to vector<1x512xf32>
    %15 = tpu.concatenate %11, %14 in 0 : vector<1x512xf32>, vector<1x512xf32> -> vector<2x512xf32>
    %c0_10 = arith.constant 0 : index
    %c0_11 = arith.constant 0 : index
    %16 = vector.load %arg5[%c0_10, %c0_11] : memref<1x512xf32, #tpu.memory_space<vmem>>, vector<1x512xf32>
    %17 = vector.broadcast %16 : vector<1x512xf32> to vector<2x512xf32>
    %18 = arith.addf %15, %17 : vector<2x512xf32>
    %cst_12 = arith.constant 0.000000e+00 : f32
    %19 = vector.broadcast %cst_12 : f32 to vector<2x512xf32>
    %20 = arith.maximumf %18, %19 : vector<2x512xf32>
    %c0_13 = arith.constant 0 : index
    %c0_14 = arith.constant 0 : index
    %21 = vector.load %arg6[%c0_13, %c0_14] : memref<1x512xf32, #tpu.memory_space<vmem>>, vector<1x512xf32>
    %22 = vector.broadcast %21 : vector<1x512xf32> to vector<2x512xf32>
    %23 = arith.mulf %20, %22 : vector<2x512xf32>
    %c0_15 = arith.constant 0 : index
    %c0_16 = arith.constant 0 : index
    %24 = vector.load %arg7[%c0_15, %c0_16] : memref<1x512xf32, #tpu.memory_space<vmem>>, vector<1x512xf32>
    %25 = vector.broadcast %24 : vector<1x512xf32> to vector<2x512xf32>
    %26 = arith.addf %23, %25 : vector<2x512xf32>
    %c0_17 = arith.constant 0 : index
    %c0_18 = arith.constant 0 : index
    %27 = vector.load %arg8[%c0_17, %c0_18] : memref<2x512xf32, #tpu.memory_space<vmem>>, vector<2x512xf32>
    tpu.vector_store %arg8[%c0_17, %c0_18], %26 {strides = array<i32>} : memref<2x512xf32, #tpu.memory_space<vmem>>, vector<2x512xf32>,
    return
  }
  func.func @transform_0(%arg0: i32) -> (i32, i32) {
    %c0_i32 = arith.constant 0 : i32
    %c0_i32_0 = arith.constant 0 : i32
    %c0_i32_1 = arith.constant 0 : i32
    return %c0_i32, %c0_i32_0 : i32, i32
  }
  func.func @transform_1(%arg0: i32) -> (i32, i32) {
    %c0_i32 = arith.constant 0 : i32
    %c0_i32_0 = arith.constant 0 : i32
    %c0_i32_1 = arith.constant 0 : i32
    return %c0_i32, %c0_i32_0 : i32, i32
  }
  func.func @transform_2(%arg0: i32) -> (i32, i32) {
    %c0_i32 = arith.constant 0 : i32
    %c0_i32_0 = arith.constant 0 : i32
    return %c0_i32, %arg0 : i32, i32
  }
  func.func @transform_3(%arg0: i32) -> (i32, i32) {
    %c0_i32 = arith.constant 0 : i32
    %c0_i32_0 = arith.constant 0 : i32
    return %c0_i32, %arg0 : i32, i32
  }
  func.func @transform_4(%arg0: i32) -> (i32, i32) {
    %c0_i32 = arith.constant 0 : i32
    %c0_i32_0 = arith.constant 0 : i32
    return %c0_i32, %arg0 : i32, i32
  }
  func.func @transform_5(%arg0: i32) -> (i32, i32) {
    %c0_i32 = arith.constant 0 : i32
    %c0_i32_0 = arith.constant 0 : i32
    return %c0_i32, %arg0 : i32, i32
  }
  func.func @transform_6(%arg0: i32) -> (i32, i32) {
    %c0_i32 = arith.constant 0 : i32
    %c0_i32_0 = arith.constant 0 : i32
    return %c0_i32, %arg0 : i32, i32
  }
  func.func @transform_7(%arg0: i32) -> (i32, i32) {
    %c0_i32 = arith.constant 0 : i32
    %c0_i32_0 = arith.constant 0 : i32
    return %c0_i32, %arg0 : i32, i32
  }
}

module attributes {stable_mosaic.version = 11 : i64} {
  func.func @_head_kernel(%arg0: i32, %arg1: memref<2x2048xf32, #tpu.memory_space<vmem>>, %arg2: memref<2048x512xbf16, #tpu.memory_space<vmem>>, %arg3: memref<1x512xf32, #tpu.memory_space<vmem>>, %arg4: memref<1x512xf32, #tpu.memory_space<vmem>>, %arg5: memref<1x512xf32, #tpu.memory_space<vmem>>, %arg6: memref<512x512xbf16, #tpu.memory_space<vmem>>, %arg7: memref<1x512xf32, #tpu.memory_space<vmem>>, %arg8: memref<1x512xf32, #tpu.memory_space<vmem>>, %arg9: memref<1x512xf32, #tpu.memory_space<vmem>>, %arg10: memref<512x128xbf16, #tpu.memory_space<vmem>>, %arg11: memref<1x128xf32, #tpu.memory_space<vmem>>, %arg12: memref<2x128xf32, #tpu.memory_space<vmem>>, %arg13: memref<2x512xf32, #tpu.memory_space<vmem>>) attributes {dimension_semantics = [#tpu.dimension_semantics<arbitrary>], iteration_bounds = array<i64: 2>, scalar_prefetch = 0 : i64, scratch_operands = 1 : i64, tpu.core_type = #tpu.core_type<tc>, window_params = [{pipeline_mode = #tpu.pipeline_mode<synchronous>, transform_indices = @transform_0, window_bounds = array<i64: 2, 2048>}, {transform_indices = @transform_1, window_bounds = array<i64: 2048, 512>}, {transform_indices = @transform_2, window_bounds = array<i64: 1, 512>}, {transform_indices = @transform_3, window_bounds = array<i64: 1, 512>}, {transform_indices = @transform_4, window_bounds = array<i64: 1, 512>}, {transform_indices = @transform_5, window_bounds = array<i64: 512, 512>}, {pipeline_mode = #tpu.pipeline_mode<synchronous>, transform_indices = @transform_6, window_bounds = array<i64: 1, 512>}, {pipeline_mode = #tpu.pipeline_mode<synchronous>, transform_indices = @transform_7, window_bounds = array<i64: 1, 512>}, {pipeline_mode = #tpu.pipeline_mode<synchronous>, transform_indices = @transform_8, window_bounds = array<i64: 1, 512>}, {pipeline_mode = #tpu.pipeline_mode<synchronous>, transform_indices = @transform_9, window_bounds = array<i64: 512, 128>}, {pipeline_mode = #tpu.pipeline_mode<synchronous>, transform_indices = @transform_10, window_bounds = array<i64: 1, 128>}, {pipeline_mode = #tpu.pipeline_mode<synchronous>, transform_indices = @transform_11, window_bounds = array<i64: 2, 128>}]} {
    %c0_i32 = arith.constant 0 : i32
    %0 = arith.cmpi eq, %arg0, %c0_i32 : i32
    %1 = arith.extui %0 : i1 to i32
    %c0_i32_0 = arith.constant 0 : i32
    %2 = arith.cmpi ne, %1, %c0_i32_0 : i32
    scf.if %2 {
      %cst_19 = arith.constant 0.000000e+00 : f32
      %27 = vector.broadcast %cst_19 : f32 to vector<2x512xf32>
      %c0_20 = arith.constant 0 : index
      %c0_21 = arith.constant 0 : index
      %28 = vector.load %arg13[%c0_20, %c0_21] : memref<2x512xf32, #tpu.memory_space<vmem>>, vector<2x512xf32>
      tpu.vector_store %arg13[%c0_20, %c0_21], %27 {strides = array<i32>} : memref<2x512xf32, #tpu.memory_space<vmem>>, vector<2x512xf32>,
    } else {
    }
    %c0 = arith.constant 0 : index
    %c0_1 = arith.constant 0 : index
    %3 = vector.load %arg1[%c0, %c0_1] : memref<2x2048xf32, #tpu.memory_space<vmem>>, vector<2x2048xf32>
    %4 = arith.truncf %3 : vector<2x2048xf32> to vector<2x2048xbf16>
    %c0_2 = arith.constant 0 : index
    %c0_3 = arith.constant 0 : index
    %5 = vector.load %arg2[%c0_2, %c0_3] : memref<2048x512xbf16, #tpu.memory_space<vmem>>, vector<2048x512xbf16>
    %cst = arith.constant dense<0.000000e+00> : vector<2x512xf32>
    %6 = tpu.matmul %4, %5, %cst {dimension_numbers = #tpu.dot_dimension_numbers<[1], [0], [0], [1], [0, 0, 1, 1], [], []>} : vector<2x2048xbf16>, vector<2048x512xbf16>, vector<2x512xf32> -> vector<2x512xf32>
    %c0_4 = arith.constant 0 : index
    %c0_5 = arith.constant 0 : index
    %7 = vector.load %arg3[%c0_4, %c0_5] : memref<1x512xf32, #tpu.memory_space<vmem>>, vector<1x512xf32>
    %8 = vector.broadcast %7 : vector<1x512xf32> to vector<2x512xf32>
    %9 = arith.addf %6, %8 : vector<2x512xf32>
    %cst_6 = arith.constant 0.000000e+00 : f32
    %10 = vector.broadcast %cst_6 : f32 to vector<2x512xf32>
    %11 = arith.maximumf %9, %10 : vector<2x512xf32>
    %c0_7 = arith.constant 0 : index
    %c0_8 = arith.constant 0 : index
    %12 = vector.load %arg4[%c0_7, %c0_8] : memref<1x512xf32, #tpu.memory_space<vmem>>, vector<1x512xf32>
    %13 = vector.broadcast %12 : vector<1x512xf32> to vector<2x512xf32>
    %14 = arith.mulf %11, %13 : vector<2x512xf32>
    %c0_9 = arith.constant 0 : index
    %c0_10 = arith.constant 0 : index
    %15 = vector.load %arg5[%c0_9, %c0_10] : memref<1x512xf32, #tpu.memory_space<vmem>>, vector<1x512xf32>
    %16 = vector.broadcast %15 : vector<1x512xf32> to vector<2x512xf32>
    %17 = arith.addf %14, %16 : vector<2x512xf32>
    %c0_11 = arith.constant 0 : index
    %c0_12 = arith.constant 0 : index
    %18 = vector.load %arg13[%c0_11, %c0_12] : memref<2x512xf32, #tpu.memory_space<vmem>>, vector<2x512xf32>
    %19 = arith.truncf %17 : vector<2x512xf32> to vector<2x512xbf16>
    %c0_13 = arith.constant 0 : index
    %c0_14 = arith.constant 0 : index
    %20 = vector.load %arg6[%c0_13, %c0_14] : memref<512x512xbf16, #tpu.memory_space<vmem>>, vector<512x512xbf16>
    %cst_15 = arith.constant dense<0.000000e+00> : vector<2x512xf32>
    %21 = tpu.matmul %19, %20, %cst_15 {dimension_numbers = #tpu.dot_dimension_numbers<[1], [0], [0], [1], [0, 0, 1, 1], [], []>} : vector<2x512xbf16>, vector<512x512xbf16>, vector<2x512xf32> -> vector<2x512xf32>
    %22 = arith.addf %18, %21 : vector<2x512xf32>
    %c0_16 = arith.constant 0 : index
    %c0_17 = arith.constant 0 : index
    %23 = vector.load %arg13[%c0_16, %c0_17] : memref<2x512xf32, #tpu.memory_space<vmem>>, vector<2x512xf32>
    tpu.vector_store %arg13[%c0_16, %c0_17], %22 {strides = array<i32>} : memref<2x512xf32, #tpu.memory_space<vmem>>, vector<2x512xf32>,
    %c1_i32 = arith.constant 1 : i32
    %24 = arith.cmpi eq, %arg0, %c1_i32 : i32
    %25 = arith.extui %24 : i1 to i32
    %c0_i32_18 = arith.constant 0 : i32
    %26 = arith.cmpi ne, %25, %c0_i32_18 : i32
    scf.if %26 {
      %c0_19 = arith.constant 0 : index
      %c0_20 = arith.constant 0 : index
      %27 = vector.load %arg13[%c0_19, %c0_20] : memref<2x512xf32, #tpu.memory_space<vmem>>, vector<2x512xf32>
      %c0_21 = arith.constant 0 : index
      %c0_22 = arith.constant 0 : index
      %28 = vector.load %arg7[%c0_21, %c0_22] : memref<1x512xf32, #tpu.memory_space<vmem>>, vector<1x512xf32>
      %29 = vector.broadcast %28 : vector<1x512xf32> to vector<2x512xf32>
      %30 = arith.addf %27, %29 : vector<2x512xf32>
      %cst_23 = arith.constant 0.000000e+00 : f32
      %31 = vector.broadcast %cst_23 : f32 to vector<2x512xf32>
      %32 = arith.maximumf %30, %31 : vector<2x512xf32>
      %c0_24 = arith.constant 0 : index
      %c0_25 = arith.constant 0 : index
      %33 = vector.load %arg8[%c0_24, %c0_25] : memref<1x512xf32, #tpu.memory_space<vmem>>, vector<1x512xf32>
      %34 = vector.broadcast %33 : vector<1x512xf32> to vector<2x512xf32>
      %35 = arith.mulf %32, %34 : vector<2x512xf32>
      %c0_26 = arith.constant 0 : index
      %c0_27 = arith.constant 0 : index
      %36 = vector.load %arg9[%c0_26, %c0_27] : memref<1x512xf32, #tpu.memory_space<vmem>>, vector<1x512xf32>
      %37 = vector.broadcast %36 : vector<1x512xf32> to vector<2x512xf32>
      %38 = arith.addf %35, %37 : vector<2x512xf32>
      %39 = arith.truncf %38 : vector<2x512xf32> to vector<2x512xbf16>
      %c0_28 = arith.constant 0 : index
      %c0_29 = arith.constant 0 : index
      %40 = vector.load %arg10[%c0_28, %c0_29] : memref<512x128xbf16, #tpu.memory_space<vmem>>, vector<512x128xbf16>
      %cst_30 = arith.constant dense<0.000000e+00> : vector<2x128xf32>
      %41 = tpu.matmul %39, %40, %cst_30 {dimension_numbers = #tpu.dot_dimension_numbers<[1], [0], [0], [1], [0, 0, 1, 1], [], []>} : vector<2x512xbf16>, vector<512x128xbf16>, vector<2x128xf32> -> vector<2x128xf32>
      %c0_31 = arith.constant 0 : index
      %c0_32 = arith.constant 0 : index
      %42 = vector.load %arg11[%c0_31, %c0_32] : memref<1x128xf32, #tpu.memory_space<vmem>>, vector<1x128xf32>
      %43 = vector.broadcast %42 : vector<1x128xf32> to vector<2x128xf32>
      %44 = arith.addf %41, %43 : vector<2x128xf32>
      %c0_33 = arith.constant 0 : index
      %c0_34 = arith.constant 0 : index
      %45 = vector.load %arg12[%c0_33, %c0_34] : memref<2x128xf32, #tpu.memory_space<vmem>>, vector<2x128xf32>
      tpu.vector_store %arg12[%c0_33, %c0_34], %44 {strides = array<i32>} : memref<2x128xf32, #tpu.memory_space<vmem>>, vector<2x128xf32>,
    } else {
    }
    return
  }
  func.func @transform_0(%arg0: i32) -> (i32, i32) {
    %c0_i32 = arith.constant 0 : i32
    %c0_i32_0 = arith.constant 0 : i32
    %c0_i32_1 = arith.constant 0 : i32
    return %c0_i32, %c0_i32_0 : i32, i32
  }
  func.func @transform_1(%arg0: i32) -> (i32, i32) {
    %c0_i32 = arith.constant 0 : i32
    %c0_i32_0 = arith.constant 0 : i32
    return %c0_i32, %arg0 : i32, i32
  }
  func.func @transform_2(%arg0: i32) -> (i32, i32) {
    %c0_i32 = arith.constant 0 : i32
    %c0_i32_0 = arith.constant 0 : i32
    return %c0_i32, %arg0 : i32, i32
  }
  func.func @transform_3(%arg0: i32) -> (i32, i32) {
    %c0_i32 = arith.constant 0 : i32
    %c0_i32_0 = arith.constant 0 : i32
    return %c0_i32, %arg0 : i32, i32
  }
  func.func @transform_4(%arg0: i32) -> (i32, i32) {
    %c0_i32 = arith.constant 0 : i32
    %c0_i32_0 = arith.constant 0 : i32
    return %c0_i32, %arg0 : i32, i32
  }
  func.func @transform_5(%arg0: i32) -> (i32, i32) {
    %c0_i32 = arith.constant 0 : i32
    %c0_i32_0 = arith.constant 0 : i32
    return %arg0, %c0_i32 : i32, i32
  }
  func.func @transform_6(%arg0: i32) -> (i32, i32) {
    %c0_i32 = arith.constant 0 : i32
    %c0_i32_0 = arith.constant 0 : i32
    %c0_i32_1 = arith.constant 0 : i32
    return %c0_i32, %c0_i32_0 : i32, i32
  }
  func.func @transform_7(%arg0: i32) -> (i32, i32) {
    %c0_i32 = arith.constant 0 : i32
    %c0_i32_0 = arith.constant 0 : i32
    %c0_i32_1 = arith.constant 0 : i32
    return %c0_i32, %c0_i32_0 : i32, i32
  }
  func.func @transform_8(%arg0: i32) -> (i32, i32) {
    %c0_i32 = arith.constant 0 : i32
    %c0_i32_0 = arith.constant 0 : i32
    %c0_i32_1 = arith.constant 0 : i32
    return %c0_i32, %c0_i32_0 : i32, i32
  }
  func.func @transform_9(%arg0: i32) -> (i32, i32) {
    %c0_i32 = arith.constant 0 : i32
    %c0_i32_0 = arith.constant 0 : i32
    %c0_i32_1 = arith.constant 0 : i32
    return %c0_i32, %c0_i32_0 : i32, i32
  }
  func.func @transform_10(%arg0: i32) -> (i32, i32) {
    %c0_i32 = arith.constant 0 : i32
    %c0_i32_0 = arith.constant 0 : i32
    %c0_i32_1 = arith.constant 0 : i32
    return %c0_i32, %c0_i32_0 : i32, i32
  }
  func.func @transform_11(%arg0: i32) -> (i32, i32) {
    %c0_i32 = arith.constant 0 : i32
    %c0_i32_0 = arith.constant 0 : i32
    %c0_i32_1 = arith.constant 0 : i32
    return %c0_i32, %c0_i32_0 : i32, i32
  }
}

</mosaic_0001>

<bundles_post_ra>
// kernel: sub.25
= control target key start
LH: loop header
LB: loop body
LE: loop exit
PB: predicated region body
PF: predicated region fallthrough
CT: control target
= control target key end

     0   :  { %vm8_vm0 = vcmask 130048   ;;  %s42_s0 = inlined_call_operand.vmem [shape: f32[32], index: 0, kind: input, shape index: {}]   ;;  %s43_s1 = inlined_call_operand.vmem [shape: f32[2,16], index: 1, kind: output, shape index: {}]  }
   0x1   :  { %v5_v0 = vld [vmem:[%s42_s0] sm:$0x1]  ;;  %s25_s0 = smov 112  }
   0x2   :  { %6 = vst [vmem:[#allocation1] sm:$0x1] %v5_v0 }
   0x9   :  { %v10_v1 = vld [vmem:[#allocation1] sm:$0x1]  }
   0xa   :  { %v7_v2 = vld [vmem:[#allocation1] sm:$0x1]   ;;  %11 = vrot.lane.b32.xlu0 %v10_v1, %s25_s0 }
   0xb   :  { %9 = vst.msk [vmem:[#allocation0] sm:$0x1] %vm8_vm0, %v7_v2  }
  0x7c   :  { %v12_v3 = vpop.permute.xlu0 %11  }
  0x7d   :  { %15 = vst.msk [vmem:[#allocation0 + $0x1] sm:$0x1] %vm8_vm0, %v12_v3  }
  0x84   :  { %v20_v4 = vld [vmem:[#allocation0] sm:$0x3] }
  0x85   :  { %23 = vst [vmem:[%s43_s1] sm:$0x3] %v20_v4 }

</bundles_post_ra>
